<compile_context>
chip_gen: v5e
topology: v5e:2x2
jax: 0.10.0
libtpu: 0.0.40
codegen_flags: <defaults>
</compile_context>

<pallas_src>
import jax
import jax.numpy as jnp
from jax.experimental import pallas as pl
from jax.experimental.pallas import tpu as pltpu

IN_FEATURES = 768
HIDDEN = 10        # output_shape * 2
OUT_FEATURES = 5   # output_shape
OUT_PAD = 128      # lane-dense output slab width (wrapper slices [:, :5])


def _mlp_kernel(x_ref, w0_ref, b0_ref, w1_ref, o_ref):
    # x_ref:  (TM, 768)     VMEM (f32 or bf16)
    # w0_ref: (768, 10)     VMEM (matches x dtype), resident across grid steps
    # b0_ref: (1, 10)       VMEM f32, resident
    # w1_ref: (10, 128)     VMEM f32, zero-padded cols 5..127, resident
    # o_ref:  (TM, 128)     VMEM (f32 or bf16), lane-dense unmasked stores
    h = jnp.dot(x_ref[...], w0_ref[...], preferred_element_type=jnp.float32)
    h = jnp.maximum(h + b0_ref[...], 0.0)            # bias + ReLU in f32
    y = jnp.dot(h, w1_ref[...], preferred_element_type=jnp.float32)
    o_ref[...] = y.astype(o_ref.dtype)


def _round_up(n, m):
    return ((n + m - 1) // m) * m


def _pick_tile(b):
    """Rows per grid step: multiple of 8, single tile up to 1024 rows."""
    return min(1024, _round_up(b, 8))


def prepare_params(w0, b0, w1, *, x_dtype=jnp.float32):
    """One-time weight prep (hoist out of the hot path).

    nn.Linear weights are passed as [in, out]. w0 is cast to the activation
    dtype (bf16 x -> bf16 w0 -> full-rate MXU with f32 accumulation); w1 is
    zero-padded to 128 output lanes for dense writeback (numerically exact).
    """
    w0p = jnp.asarray(w0).astype(x_dtype)
    b0p = jnp.asarray(b0).reshape(1, HIDDEN).astype(jnp.float32)
    w1p = jnp.zeros((HIDDEN, OUT_PAD), jnp.float32)
    w1p = w1p.at[:, :OUT_FEATURES].set(jnp.asarray(w1).astype(jnp.float32))
    return w0p, b0p, w1p


def last_module_apply(x, w0p, b0p, w1p, *, slab_dtype=jnp.float32,
                      tm=None, x_buffers=2):
    """x: (B, 768) f32/bf16; prepped params from prepare_params -> (B, 5)."""
    B = x.shape[0]
    assert x.shape[1] == IN_FEATURES
    if tm is None:
        tm = _pick_tile(B)
    grid_m = pl.cdiv(B, tm)   # ragged last block: over-read rows are discarded

    x_spec_kwargs = {}
    if x_buffers != 2:        # optional deeper pipelining for huge batches
        x_spec_kwargs["pipeline_mode"] = pl.Buffered(x_buffers)

    out_slab = pl.pallas_call(
        _mlp_kernel,
        out_shape=jax.ShapeDtypeStruct((B, OUT_PAD), slab_dtype),
        grid_spec=pl.GridSpec(
            grid=(grid_m,),
            in_specs=[
                pl.BlockSpec((tm, IN_FEATURES), lambda i: (i, 0),
                             **x_spec_kwargs),
                pl.BlockSpec((IN_FEATURES, HIDDEN), lambda i: (0, 0)),
                pl.BlockSpec((1, HIDDEN), lambda i: (0, 0)),
                pl.BlockSpec((HIDDEN, OUT_PAD), lambda i: (0, 0)),
            ],
            out_specs=pl.BlockSpec((tm, OUT_PAD), lambda i: (i, 0)),
        ),
        compiler_params=pltpu.CompilerParams(
            dimension_semantics=("parallel",),   # megacore sharding on v7x
        ),
    )(x, w0p, b0p, w1p)

    return out_slab[:, :OUT_FEATURES]


def last_module_forward(x, w0, b0, w1, **kwargs):
    """Convenience wrapper: prep weights + apply (prefer prepare_params once)."""
    params = prepare_params(w0, b0, w1, x_dtype=x.dtype)
    return last_module_apply(x, *params, **kwargs)


def _reference(x, w0, b0, w1):
    h = jnp.maximum(x.astype(jnp.float32) @ w0.astype(jnp.float32) + b0, 0.0)
    return h @ w1


if __name__ == "__main__":
    key = jax.random.PRNGKey(0)
    k_x, k_w0, k_b0, k_w1 = jax.random.split(key, 4)

    # Small-shape deterministic inputs (nn.Linear weights stored as [in, out]).
    B = 16
    x = jax.random.normal(k_x, (B, IN_FEATURES), dtype=jnp.float32)
    w0 = jax.random.normal(k_w0, (IN_FEATURES, HIDDEN), dtype=jnp.float32) * 0.02
    b0 = jax.random.normal(k_b0, (HIDDEN,), dtype=jnp.float32) * 0.02
    w1 = jax.random.normal(k_w1, (HIDDEN, OUT_FEATURES), dtype=jnp.float32) * 0.02

    ref = _reference(x, w0, b0, w1)

    # f32 path, single tile (no forced grid split) — exact vs reference.
    out = jax.block_until_ready(last_module_forward(x, w0, b0, w1))
    assert out.shape == (B, OUT_FEATURES), out.shape
    assert jnp.allclose(out, ref, atol=1e-5, rtol=1e-5), "f32 mismatch vs reference"

    # Weights prepped once + jitted apply (hoisted weight prep, no jnp.pad of x).
    params_f32 = prepare_params(w0, b0, w1, x_dtype=jnp.float32)
    apply_jit = jax.jit(lambda xx, a, b, c: last_module_apply(xx, a, b, c))
    out_jit = jax.block_until_ready(apply_jit(x, *params_f32))
    assert jnp.allclose(out_jit, ref, atol=1e-5, rtol=1e-5), "jit mismatch"

    # Ragged batch, single over-hanging block (B=13, tm=16): pad-free path.
    out_odd = jax.block_until_ready(last_module_forward(x[:13], w0, b0, w1))
    assert out_odd.shape == (13, OUT_FEATURES), out_odd.shape
    assert jnp.allclose(out_odd, ref[:13], atol=1e-5, rtol=1e-5), "odd-batch mismatch"

    # Ragged batch with a multi-step grid and a partial last block (tm=8, B=13):
    # garbage over-read rows only feed discarded output rows.
    out_rag = jax.block_until_ready(last_module_forward(x[:13], w0, b0, w1, tm=8))
    assert out_rag.shape == (13, OUT_FEATURES), out_rag.shape
    assert jnp.allclose(out_rag, ref[:13], atol=1e-5, rtol=1e-5), "ragged-grid mismatch"

    # bf16-x path (halves the dominant x HBM read on every generation), f32 acc.
    x_bf16 = x.astype(jnp.bfloat16)
    params_bf16 = prepare_params(w0, b0, w1, x_dtype=jnp.bfloat16)
    out_bf16 = jax.block_until_ready(last_module_apply(x_bf16, *params_bf16))
    assert out_bf16.shape == (B, OUT_FEATURES), out_bf16.shape
    assert jnp.allclose(out_bf16, ref, atol=5e-2, rtol=5e-2), "bf16 mismatch vs reference"

    # bf16 output slab (halves the padded-slab writeback; logits are bf16).
    out_bf16_slab = jax.block_until_ready(
        last_module_apply(x_bf16, *params_bf16, slab_dtype=jnp.bfloat16))
    assert out_bf16_slab.shape == (B, OUT_FEATURES), out_bf16_slab.shape
    assert jnp.allclose(out_bf16_slab.astype(jnp.float32), ref,
                        atol=5e-2, rtol=5e-2), "bf16-slab mismatch vs reference"

    print("KERNEL_OK")
</pallas_src>

<mosaic_0001>
module attributes {stable_mosaic.version = 11 : i64} {
  func.func @_mlp_kernel(%arg0: i32, %arg1: memref<16x768xf32, #tpu.memory_space<vmem>>, %arg2: memref<768x10xf32, #tpu.memory_space<vmem>>, %arg3: memref<1x10xf32, #tpu.memory_space<vmem>>, %arg4: memref<10x128xf32, #tpu.memory_space<vmem>>, %arg5: memref<16x128xf32, #tpu.memory_space<vmem>>) attributes {dimension_semantics = [#tpu.dimension_semantics<parallel>], iteration_bounds = array<i64: 1>, scalar_prefetch = 0 : i64, scratch_operands = 0 : i64, tpu.core_type = #tpu.core_type<tc>, window_params = [{transform_indices = @transform_0, window_bounds = array<i64: 16, 768>}, {pipeline_mode = #tpu.pipeline_mode<synchronous>, transform_indices = @transform_1, window_bounds = array<i64: 768, 10>}, {pipeline_mode = #tpu.pipeline_mode<synchronous>, transform_indices = @transform_2, window_bounds = array<i64: 1, 10>}, {pipeline_mode = #tpu.pipeline_mode<synchronous>, transform_indices = @transform_3, window_bounds = array<i64: 10, 128>}, {transform_indices = @transform_4, window_bounds = array<i64: 16, 128>}]} {
    %c0 = arith.constant 0 : index
    %c0_0 = arith.constant 0 : index
    %0 = vector.load %arg1[%c0, %c0_0] : memref<16x768xf32, #tpu.memory_space<vmem>>, vector<16x768xf32>
    %c0_1 = arith.constant 0 : index
    %c0_2 = arith.constant 0 : index
    %1 = vector.load %arg2[%c0_1, %c0_2] : memref<768x10xf32, #tpu.memory_space<vmem>>, vector<768x10xf32>
    %cst = arith.constant dense<0.000000e+00> : vector<16x10xf32>
    %2 = tpu.matmul %0, %1, %cst {dimension_numbers = #tpu.dot_dimension_numbers<[1], [0], [0], [1], [0, 0, 1, 1], [], []>} : vector<16x768xf32>, vector<768x10xf32>, vector<16x10xf32> -> vector<16x10xf32>
    %c0_3 = arith.constant 0 : index
    %c0_4 = arith.constant 0 : index
    %3 = vector.load %arg3[%c0_3, %c0_4] : memref<1x10xf32, #tpu.memory_space<vmem>>, vector<1x10xf32>
    %4 = vector.broadcast %3 : vector<1x10xf32> to vector<16x10xf32>
    %5 = arith.addf %2, %4 : vector<16x10xf32>
    %cst_5 = arith.constant 0.000000e+00 : f32
    %6 = vector.broadcast %cst_5 : f32 to vector<16x10xf32>
    %7 = arith.maximumf %5, %6 : vector<16x10xf32>
    %c0_6 = arith.constant 0 : index
    %c0_7 = arith.constant 0 : index
    %8 = vector.load %arg4[%c0_6, %c0_7] : memref<10x128xf32, #tpu.memory_space<vmem>>, vector<10x128xf32>
    %cst_8 = arith.constant dense<0.000000e+00> : vector<16x128xf32>
    %9 = tpu.matmul %7, %8, %cst_8 {dimension_numbers = #tpu.dot_dimension_numbers<[1], [0], [0], [1], [0, 0, 1, 1], [], []>} : vector<16x10xf32>, vector<10x128xf32>, vector<16x128xf32> -> vector<16x128xf32>
    %c0_9 = arith.constant 0 : index
    %c0_10 = arith.constant 0 : index
    %10 = vector.load %arg5[%c0_9, %c0_10] : memref<16x128xf32, #tpu.memory_space<vmem>>, vector<16x128xf32>
    tpu.vector_store %arg5[%c0_9, %c0_10], %9 {strides = array<i32>} : memref<16x128xf32, #tpu.memory_space<vmem>>, vector<16x128xf32>,
    return
  }
  func.func @transform_0(%arg0: i32) -> (i32, i32) {
    %c0_i32 = arith.constant 0 : i32
    %c0_i32_0 = arith.constant 0 : i32
    return %arg0, %c0_i32 : i32, i32
  }
  func.func @transform_1(%arg0: i32) -> (i32, i32) {
    %c0_i32 = arith.constant 0 : i32
    %c0_i32_0 = arith.constant 0 : i32
    %c0_i32_1 = arith.constant 0 : i32
    return %c0_i32, %c0_i32_0 : i32, i32
  }
  func.func @transform_2(%arg0: i32) -> (i32, i32) {
    %c0_i32 = arith.constant 0 : i32
    %c0_i32_0 = arith.constant 0 : i32
    %c0_i32_1 = arith.constant 0 : i32
    return %c0_i32, %c0_i32_0 : i32, i32
  }
  func.func @transform_3(%arg0: i32) -> (i32, i32) {
    %c0_i32 = arith.constant 0 : i32
    %c0_i32_0 = arith.constant 0 : i32
    %c0_i32_1 = arith.constant 0 : i32
    return %c0_i32, %c0_i32_0 : i32, i32
  }
  func.func @transform_4(%arg0: i32) -> (i32, i32) {
    %c0_i32 = arith.constant 0 : i32
    %c0_i32_0 = arith.constant 0 : i32
    return %arg0, %c0_i32 : i32, i32
  }
}

</mosaic_0001>

<bundles_post_ra>
// kernel: tpu_custom_call.1
= control target key start
LH: loop header
LB: loop body
LE: loop exit
PB: predicated region body
PF: predicated region fallthrough
CT: control target
= control target key end

     0   :  { %s739_s0 = inlined_call_operand.vmem [shape: f32[16,768], index: 0, kind: input, shape index: {}]   ;;  %s740_s1 = inlined_call_operand.vmem [shape: f32[768,10], index: 1, kind: input, shape index: {}]   ;;  %s741_s2 = inlined_call_operand.vmem [shape: f32[1,10], index: 2, kind: input, shape index: {}]   ;;  %s742_s3 = inlined_call_operand.vmem [shape: f32[10,128], index: 3, kind: input, shape index: {}]   ;;  %s743_s4 = inlined_call_operand.hbm [shape: f32[16,128], index: 4, kind: output, shape index: {}]  }
   0x1   :  { %v45_v0 = vld [vmem:[%s740_s1 + $0x78] sm:$0xff]  ;;  %v44_v3 = vld [vmem:[%s740_s1 + $0x70] sm:$0xff]  ;;  %v43_v6 = vld [vmem:[%s740_s1 + $0x68] sm:$0xff] }
   0x2   :  { %v61_v1 = vld [vmem:[%s740_s1 + $0xf8] sm:$0xff]  ;;  %130 = vmatpush.msra.mxu0 %v45_v0  ;;  %v60_v4 = vld [vmem:[%s740_s1 + $0xf0] sm:$0xff]  ;;  %v59_v7 = vld [vmem:[%s740_s1 + $0xe8] sm:$0xff] }
   0x3   :  { %v93_v2 = vld [vmem:[%s740_s1 + $0x1f8] sm:$0xff]  ;;  %153 = vmatpush.msra.mxu1 %v61_v1  ;;  %v92_v5 = vld [vmem:[%s740_s1 + $0x1f0] sm:$0xff]  ;;  %v91_v8 = vld [vmem:[%s740_s1 + $0x1e8] sm:$0xff] }
   0x4   :  { %199 = vmatpush.msra.mxu3 %v93_v2  ;;  %131 = vmatpush.msra.mxu0 %v44_v3  ;;  %v42_v9 = vld [vmem:[%s740_s1 + $0x60] sm:$0xff]  ;;  %v41_v12 = vld [vmem:[%s740_s1 + $0x58] sm:$0xff]  ;;  %v40_v16 = vld [vmem:[%s740_s1 + $0x50] sm:$0xff] }
   0x5   :  { %154 = vmatpush.msra.mxu1 %v60_v4  ;;  %v58_v10 = vld [vmem:[%s740_s1 + $0xe0] sm:$0xff]  ;;  %v57_v13 = vld [vmem:[%s740_s1 + $0xd8] sm:$0xff]  ;;  %v56_v17 = vld [vmem:[%s740_s1 + $0xd0] sm:$0xff] }
   0x6   :  { %200 = vmatpush.msra.mxu3 %v92_v5  ;;  %132 = vmatpush.msra.mxu0 %v43_v6  ;;  %v90_v11 = vld [vmem:[%s740_s1 + $0x1e0] sm:$0xff]  ;;  %v89_v14 = vld [vmem:[%s740_s1 + $0x1d8] sm:$0xff]  ;;  %v76_v18 = vld [vmem:[%s740_s1 + $0x170] sm:$0xff] }
   0x7   :  { %155 = vmatpush.msra.mxu1 %v59_v7  ;;  %v77_v15 = vld [vmem:[%s740_s1 + $0x178] sm:$0xff]  ;;  %v88_v19 = vld [vmem:[%s740_s1 + $0x1d0] sm:$0xff]  ;;  %v75_v20 = vld [vmem:[%s740_s1 + $0x168] sm:$0xff] }
   0x8   :  { %201 = vmatpush.msra.mxu3 %v91_v8  ;;  %133 = vmatpush.msra.mxu0 %v42_v9  ;;  %v39_v21 = vld [vmem:[%s740_s1 + $0x48] sm:$0xff]  ;;  %v74_v24 = vld [vmem:[%s740_s1 + $0x160] sm:$0xff]  ;;  %v73_v28 = vld [vmem:[%s740_s1 + $0x158] sm:$0xff] }
   0x9   :  { %156 = vmatpush.msra.mxu1 %v58_v10  ;;  %176 = vmatpush.msra.mxu2 %v77_v15  ;;  %v55_v22 = vld [vmem:[%s740_s1 + $0xc8] sm:$0xff]  ;;  %v38_v25 = vld [vmem:[%s740_s1 + $0x40] sm:$0xff]  ;;  %v37_v29 = vld [vmem:[%s740_s1 + $0x38] sm:$0xff] }
   0xa   :  { %202 = vmatpush.msra.mxu3 %v90_v11  ;;  %134 = vmatpush.msra.mxu0 %v41_v12  ;;  %v87_v23 = vld [vmem:[%s740_s1 + $0x1c8] sm:$0xff]  ;;  %v54_v26 = vld [vmem:[%s740_s1 + $0xc0] sm:$0xff]  ;;  %v53_v30 = vld [vmem:[%s740_s1 + $0xb8] sm:$0xff] }
   0xb   :  { %157 = vmatpush.msra.mxu1 %v57_v13  ;;  %177 = vmatpush.msra.mxu2 %v76_v18  ;;  %v86_v27 = vld [vmem:[%s740_s1 + $0x1c0] sm:$0xff]  ;;  %v85_v31 = vld [vmem:[%s740_s1 + $0x1b8] sm:$0xff]  ;;  %v72_v32 = vld [vmem:[%s740_s1 + $0x150] sm:$0xff] }
   0xc   :  { %203 = vmatpush.msra.mxu3 %v89_v14  ;;  %135 = vmatpush.msra.mxu0 %v40_v16  ;;  %v36_v33 = vld [vmem:[%s740_s1 + $0x30] sm:$0xff]  ;;  %v71_v36 = vld [vmem:[%s740_s1 + $0x148] sm:$0xff]  ;;  %v70_v40 = vld [vmem:[%s740_s1 + $0x140] sm:$0xff] }
   0xd   :  { %158 = vmatpush.msra.mxu1 %v56_v17  ;;  %178 = vmatpush.msra.mxu2 %v75_v20  ;;  %v52_v34 = vld [vmem:[%s740_s1 + $0xb0] sm:$0xff]  ;;  %v35_v37 = vld [vmem:[%s740_s1 + $0x28] sm:$0xff]  ;;  %v34_v41 = vld [vmem:[%s740_s1 + $0x20] sm:$0xff] }
   0xe   :  { %204 = vmatpush.msra.mxu3 %v88_v19  ;;  %136 = vmatpush.msra.mxu0 %v39_v21  ;;  %v84_v35 = vld [vmem:[%s740_s1 + $0x1b0] sm:$0xff]  ;;  %v51_v38 = vld [vmem:[%s740_s1 + $0xa8] sm:$0xff]  ;;  %v50_v42 = vld [vmem:[%s740_s1 + $0xa0] sm:$0xff] }
   0xf   :  { %159 = vmatpush.msra.mxu1 %v55_v22  ;;  %179 = vmatpush.msra.mxu2 %v74_v24  ;;  %v83_v39 = vld [vmem:[%s740_s1 + $0x1a8] sm:$0xff]  ;;  %v82_v43 = vld [vmem:[%s740_s1 + $0x1a0] sm:$0xff]  ;;  %v69_v44 = vld [vmem:[%s740_s1 + $0x138] sm:$0xff] }
  0x10   :  { %205 = vmatpush.msra.mxu3 %v87_v23  ;;  %137 = vmatpush.msra.mxu0 %v38_v25  ;;  %v33_v45 = vld [vmem:[%s740_s1 + $0x18] sm:$0xff]  ;;  %v68_v48 = vld [vmem:[%s740_s1 + $0x130] sm:$0xff]  ;;  %v67_v52 = vld [vmem:[%s740_s1 + $0x128] sm:$0xff] }
  0x11   :  { %160 = vmatpush.msra.mxu1 %v54_v26  ;;  %180 = vmatpush.msra.mxu2 %v73_v28  ;;  %v49_v46 = vld [vmem:[%s740_s1 + $0x98] sm:$0xff]  ;;  %v32_v49 = vld [vmem:[%s740_s1 + $0x10] sm:$0xff]  ;;  %v31_v53 = vld [vmem:[%s740_s1 + $0x8] sm:$0xff] }
  0x12   :  { %206 = vmatpush.msra.mxu3 %v86_v27  ;;  %138 = vmatpush.msra.mxu0 %v37_v29  ;;  %v81_v47 = vld [vmem:[%s740_s1 + $0x198] sm:$0xff]  ;;  %v48_v50 = vld [vmem:[%s740_s1 + $0x90] sm:$0xff]  ;;  %v47_v54 = vld [vmem:[%s740_s1 + $0x88] sm:$0xff] }
  0x13   :  { %161 = vmatpush.msra.mxu1 %v53_v30  ;;  %181 = vmatpush.msra.mxu2 %v72_v32  ;;  %v80_v51 = vld [vmem:[%s740_s1 + $0x190] sm:$0xff]  ;;  %v79_v55 = vld [vmem:[%s740_s1 + $0x188] sm:$0xff]  ;;  %v66_v56 = vld [vmem:[%s740_s1 + $0x120] sm:$0xff] }
  0x14   :  { %207 = vmatpush.msra.mxu3 %v85_v31  ;;  %139 = vmatpush.msra.mxu0 %v36_v33  ;;  %v30_v57 = vld [vmem:[%s740_s1] sm:$0xff]  ;;  %v109_v60 = vld [vmem:[%s740_s1 + $0x278] sm:$0xff]  ;;  %v108_v62 = vld [vmem:[%s740_s1 + $0x270] sm:$0xff] }
  0x15   :  { %162 = vmatpush.msra.mxu1 %v52_v34  ;;  %182 = vmatpush.msra.mxu2 %v71_v36  ;;  %v46_v58 = vld [vmem:[%s740_s1 + $0x80] sm:$0xff]  ;;  %v125_v61 = vld [vmem:[%s740_s1 + $0x2f8] sm:$0xff]  ;;  %v124_v0 = vld [vmem:[%s740_s1 + $0x2f0] sm:$0xff] }
  0x16   :  { %208 = vmatpush.msra.mxu3 %v84_v35  ;;  %140 = vmatpush.msra.mxu0 %v35_v37  ;;  %v78_v59 = vld [vmem:[%s740_s1 + $0x180] sm:$0xff]  ;;  %v65_v63 = vld [vmem:[%s740_s1 + $0x118] sm:$0xff]  ;;  %v107_v1 = vld [vmem:[%s740_s1 + $0x268] sm:$0xff] }
  0x17   :  { %163 = vmatpush.msra.mxu1 %v51_v38  ;;  %183 = vmatpush.msra.mxu2 %v70_v40  ;;  %v64_v2 = vld [vmem:[%s740_s1 + $0x110] sm:$0xff]  ;;  %v123_v3 = vld [vmem:[%s740_s1 + $0x2e8] sm:$0xff]  ;;  %v106_v4 = vld [vmem:[%s740_s1 + $0x260] sm:$0xff] }
  0x18   :  { %209 = vmatpush.msra.mxu3 %v83_v39  ;;  %141 = vmatpush.msra.mxu0 %v34_v41  ;;  %v63_v5 = vld [vmem:[%s740_s1 + $0x108] sm:$0xff]  ;;  %v122_v6 = vld [vmem:[%s740_s1 + $0x2e0] sm:$0xff] }
  0x19   :  { %164 = vmatpush.msra.mxu1 %v50_v42  ;;  %184 = vmatpush.msra.mxu2 %v69_v44 }
  0x1a   :  { %210 = vmatpush.msra.mxu3 %v82_v43  ;;  %142 = vmatpush.msra.mxu0 %v33_v45 }
  0x1b   :  { %165 = vmatpush.msra.mxu1 %v49_v46  ;;  %185 = vmatpush.msra.mxu2 %v68_v48 }
  0x1c   :  { %211 = vmatpush.msra.mxu3 %v81_v47  ;;  %143 = vmatpush.msra.mxu0 %v32_v49 }
  0x1d   :  { %166 = vmatpush.msra.mxu1 %v48_v50  ;;  %186 = vmatpush.msra.mxu2 %v67_v52 }
  0x1e   :  { %212 = vmatpush.msra.mxu3 %v80_v51  ;;  %144 = vmatpush.msra.mxu0 %v31_v53 }
  0x1f   :  { %167 = vmatpush.msra.mxu1 %v47_v54  ;;  %187 = vmatpush.msra.mxu2 %v66_v56 }
  0x20   :  { %213 = vmatpush.msra.mxu3 %v79_v55  ;;  %145 = vmatpush.msra.mxu0 %v30_v57 }
  0x21   :  { %168 = vmatpush.msra.mxu1 %v46_v58  ;;  %188 = vmatpush.msra.mxu2 %v65_v63 }
  0x22   :  { %214 = vmatpush.msra.mxu3 %v78_v59  ;;  %222 = vmatpush.msrb.mxu0 %v109_v60 }
  0x23   :  { %245 = vmatpush.msrb.mxu1 %v125_v61  ;;  %189 = vmatpush.msra.mxu2 %v64_v2 }
  0x24   :  { %329 = vmatpush.msrb.mxu3 %v109_v60  ;;  %223 = vmatpush.msrb.mxu0 %v108_v62 }
  0x25   :  { %246 = vmatpush.msrb.mxu1 %v124_v0 }
  0x26   :  { %330 = vmatpush.msrb.mxu3 %v108_v62  ;;  %224 = vmatpush.msrb.mxu0 %v107_v1 }
  0x27   :  { %9 = vsyncpa [#allocation3], 0  ;;  %247 = vmatpush.msrb.mxu1 %v123_v3  ;;  %v105_v7 = vld [vmem:[%s740_s1 + $0x258] sm:$0xff]  ;;  %v62_v8 = vld [vmem:[%s740_s1 + $0x100] sm:$0xff]  ;;  %190 = vmatpush.msra.mxu2 %v63_v5  ;;  %vm279_vm0 = vcmask 1041408   ;;  %vm272_vm1 = vcmask 80896  }
  0x28   :  { %331 = vmatpush.msrb.mxu3 %v107_v1  ;;  %225 = vmatpush.msrb.mxu0 %v106_v4  ;;  %v121_v9 = vld [vmem:[%s740_s1 + $0x2d8] sm:$0xff]  ;;  %v104_v10 = vld [vmem:[%s740_s1 + $0x250] sm:$0xff]  ;;  %v103_v13 = vld [vmem:[%s740_s1 + $0x248] sm:$0xff]  ;;  %s314_s29 = sshll.u32 %s743_s4, 4  ;;  %s376_s30 = smov 128   ;;  %s315_s29 = int_to_ptr.hbm [resolvable:$true] %s314_s29 }
  0x29   :  { %248 = vmatpush.msrb.mxu1 %v122_v6  ;;  %v20_v11 = vld [vmem:[%s739_s0 + $0x10] sm:$0xff]  ;;  %191 = vmatpush.msra.mxu2 %v62_v8  ;;  %v19_v14 = vld [vmem:[%s739_s0 + $0x8] sm:$0xff]  ;;  %v102_v16 = vld [vmem:[%s740_s1 + $0x240] sm:$0xff]  ;;  %s377_s5 = smov 8  }
  0x2a   :  { %332 = vmatpush.msrb.mxu3 %v106_v4  ;;  %226 = vmatpush.msrb.mxu0 %v105_v7  ;;  %v120_v12 = vld [vmem:[%s740_s1 + $0x2d0] sm:$0xff]  ;;  %v119_v15 = vld [vmem:[%s740_s1 + $0x2c8] sm:$0xff]  ;;  %v21_v17 = vld [vmem:[%s739_s0 + $0x18] sm:$0xff] }
  0x2b   :  { %249 = vmatpush.msrb.mxu1 %v121_v9  ;;  %192 = vmatmul.f32.vlgmr.msra.gmra.mxu2 %v20_v11  ;;  %v118_v18 = vld [vmem:[%s740_s1 + $0x2c0] sm:$0xff]  ;;  %v101_v20 = vld [vmem:[%s740_s1 + $0x238] sm:$0xff]  ;;  %v100_v23 = vld [vmem:[%s740_s1 + $0x230] sm:$0xff] }
  0x2c   :  { %333 = vmatpush.msrb.mxu3 %v105_v7  ;;  %227 = vmatpush.msrb.mxu0 %v104_v10  ;;  %v18_v19 = vld [vmem:[%s739_s0] sm:$0xff]  ;;  %v117_v21 = vld [vmem:[%s740_s1 + $0x2b8] sm:$0xff]  ;;  %v116_v24 = vld [vmem:[%s740_s1 + $0x2b0] sm:$0xff] }
  0x2d   :  { %250 = vmatpush.msrb.mxu1 %v120_v12  ;;  %215 = vmatmul.f32.vlgmr.msra.gmra.mxu3 %v21_v17  ;;  %v26_v22 = vld [vmem:[%s739_s0 + $0x40] sm:$0xff]  ;;  %v99_v25 = vld [vmem:[%s740_s1 + $0x228] sm:$0xff]  ;;  %v24_v30 = vld [vmem:[%s739_s0 + $0x30] sm:$0xff] }
  0x2e   :  { %334 = vmatpush.msrb.mxu3 %v104_v10  ;;  %228 = vmatpush.msrb.mxu0 %v103_v13  ;;  %v115_v26 = vld [vmem:[%s740_s1 + $0x2a8] sm:$0xff]  ;;  %v98_v28 = vld [vmem:[%s740_s1 + $0x220] sm:$0xff]  ;;  %v25_v31 = vld [vmem:[%s739_s0 + $0x38] sm:$0xff] }
  0x2f   :  { %169 = vmatmul.f32.vlgmr.msra.gmra.mxu1 %v19_v14  ;;  %146 = vmatmul.f32.vlgmr.msra.gmra.mxu0 %v18_v19  ;;  %v27_v27 = vld [vmem:[%s739_s0 + $0x48] sm:$0xff]  ;;  %v114_v29 = vld [vmem:[%s740_s1 + $0x2a0] sm:$0xff]  ;;  %v97_v32 = vld [vmem:[%s740_s1 + $0x218] sm:$0xff] }
  0x30   :  { %335 = vmatpush.msrb.mxu3 %v103_v13  ;;  %251 = vmatpush.msrb.mxu1 %v119_v15  ;;  %v113_v33 = vld [vmem:[%s740_s1 + $0x298] sm:$0xff]  ;;  %v96_v34 = vld [vmem:[%s740_s1 + $0x210] sm:$0xff]  ;;  %v95_v36 = vld [vmem:[%s740_s1 + $0x208] sm:$0xff] }
  0x31   :  { %229 = vmatpush.msrb.mxu0 %v102_v16  ;;  %v112_v35 = vld [vmem:[%s740_s1 + $0x290] sm:$0xff]  ;;  %v111_v37 = vld [vmem:[%s740_s1 + $0x288] sm:$0xff]  ;;  %v94_v38 = vld [vmem:[%s740_s1 + $0x200] sm:$0xff] }
  0x32   :  { %336 = vmatpush.msrb.mxu3 %v102_v16  ;;  %252 = vmatpush.msrb.mxu1 %v118_v18  ;;  %v110_v39 = vld [vmem:[%s740_s1 + $0x280] sm:$0xff]  ;;  %v28_v41 = vld [vmem:[%s739_s0 + $0x50] sm:$0xff]  ;;  %v23_v42 = vld [vmem:[%s739_s0 + $0x28] sm:$0xff] }
  0x33   :  { %230 = vmatpush.msrb.mxu0 %v101_v20  ;;  %195 = vmatmul.f32.gmra.mxu2 %v26_v22  ;;  %v22_v40 = vld [vmem:[%s739_s0 + $0x20] sm:$0xff]  ;;  %v29_v43 = vld [vmem:[%s739_s0 + $0x58] sm:$0xff]  ;;  %v271_v44 = vld [vmem:[%s742_s3 + $0x8] sm:$0x3]  ;;  %s375_s0 = smov [#allocation2]  }
  0x34   :  { %337 = vmatpush.msrb.mxu3 %v101_v20  ;;  %253 = vmatpush.msrb.mxu1 %v117_v21  ;;  %v270_v45 = vld [vmem:[%s742_s3] sm:$0xff] }
  0x35   :  { %231 = vmatpush.msrb.mxu0 %v100_v23  ;;  %218 = vmatmul.f32.gmra.mxu3 %v27_v27  ;;  %v348_v47 = vld [vmem:[%s741_s2] ss:$0 sm:$0xff]  ;;  %s312_s2 = sshll.u32 %s375_s0, 4  ;;  %s313_s2 = int_to_ptr.vmem [resolvable:$true] %s312_s2 }
  0x36   :  { %338 = vmatpush.msrb.mxu3 %v100_v23  ;;  %254 = vmatpush.msrb.mxu1 %v116_v24 }
  0x37   :  { %232 = vmatpush.msrb.mxu0 %v99_v25  ;;  %172 = vmatmul.f32.gmra.mxu1 %v25_v31 }
  0x38   :  { %339 = vmatpush.msrb.mxu3 %v99_v25  ;;  %255 = vmatpush.msrb.mxu1 %v115_v26 }
  0x39   :  { %233 = vmatpush.msrb.mxu0 %v98_v28  ;;  %326 = vmatpush.msk.msrb.mxu2 %vm279_vm0, %v271_v44 }
  0x3a   :  { %340 = vmatpush.msrb.mxu3 %v98_v28  ;;  %256 = vmatpush.msrb.mxu1 %v114_v29 }
  0x3b   :  { %149 = vmatmul.f32.gmra.mxu0 %v24_v30  ;;  %298 = vmatpush.msrb.mxu2 %v270_v45 }
  0x3c   :  { %234 = vmatpush.msrb.mxu0 %v97_v32  ;;  %341 = vmatpush.msrb.mxu3 %v97_v32 }
  0x3d   :  { %257 = vmatpush.msrb.mxu1 %v113_v33 }
  0x3e   :  { %235 = vmatpush.msrb.mxu0 %v96_v34  ;;  %342 = vmatpush.msrb.mxu3 %v96_v34 }
  0x3f   :  { %258 = vmatpush.msrb.mxu1 %v112_v35 }
  0x40   :  { %236 = vmatpush.msrb.mxu0 %v95_v36  ;;  %343 = vmatpush.msrb.mxu3 %v95_v36 }
  0x41   :  { %259 = vmatpush.msrb.mxu1 %v111_v37 }
  0x42   :  { %237 = vmatpush.msrb.mxu0 %v94_v38  ;;  %344 = vmatpush.msrb.mxu3 %v94_v38 }
  0x43   :  { %260 = vmatpush.msrb.mxu1 %v110_v39  ;;  %238 = vmatmul.f32.vlgmr.msrb.gmra.mxu0 %v22_v40 }
  0x44   :  { %241 = vmatmul.f32.vlgmr.msrb.gmra.mxu3 %v28_v41  ;;  %261 = vmatmul.f32.vlgmr.msrb.gmra.mxu1 %v23_v42 }
  0x4c   :  { %264 = vmatmul.f32.gmra.mxu1 %v29_v43 }
  0xac   :  { %v170_v46 = vpop.f32.mrf.mxu1  ;;  %v147_v48 = vpop.f32.mrf.mxu0 }
  0xad   :  { %v148_v49 = vadd.f32 %v348_v47, %v147_v48 }
  0xae   :  { %v193_v51 = vpop.f32.mrf.mxu2 }
  0xaf   :  { %v171_v52 = vadd.f32 %v170_v46, %v148_v49 }
  0xb0   :  { %v216_v50 = vpop.f32.mrf.mxu3 }
  0xb1   :  { %v194_v56 = vadd.f32 %v193_v51, %v171_v52 }
  0xb3   :  { %v217_v60 = vadd.f32 %v216_v50, %v194_v56 }
  0xb4   :  { %v173_v54 = vpop.f32.mrf.mxu1 }
  0xb6   :  { %v196_v59 = vpop.f32.mrf.mxu2 }
  0xb8   :  { %v150_v53 = vpop.f32.mrf.mxu0  ;;  %v219_v57 = vpop.f32.mrf.mxu3 }
  0xb9   :  { %v151_v55 = vadd.f32 %v348_v47, %v150_v53 }
  0xbb   :  { %v174_v58 = vadd.f32 %v173_v54, %v151_v55 }
  0xbd   :  { %v197_v62 = vadd.f32 %v196_v59, %v174_v58 }
  0xbf   :  { %v220_v2 = vadd.f32 %v219_v57, %v197_v62 }
  0xc0   :  { %v239_v61 = vpop.f32.mrf.mxu0 }
  0xc1   :  { %v240_v63 = vadd.f32 %v239_v61, %v217_v60  ;;  %v262_v0 = vpop.f32.mrf.mxu1 }
  0xc3   :  { %v263_v1 = vadd.f32 %v262_v0, %v240_v63 }
  0xc5   :  { %v268_v3 = vmax.f32 %v263_v1, 0.0 }
  0xc7   :  { %v242_v4 = vpop.f32.mrf.mxu3  ;;  %327 = vmatmul.msk.f32.vlgmr.msrb.gmra.mxu2 %vm272_vm1, %v268_v3 }
  0xc8   :  { %v243_v5 = vadd.f32 %v242_v4, %v220_v2 }
  0xc9   :  { %v265_v6 = vpop.f32.mrf.mxu1 }
  0xca   :  { %v266_v7 = vadd.f32 %v265_v6, %v243_v5 }
  0xcc   :  { %v269_v8 = vmax.f32 %v266_v7, 0.0 }
  0xcf   :  { %328 = vmatmul.msk.f32.gmra.mxu2 %vm272_vm1, %v269_v8 }
 0x14a   :  { %v300_v9 = vpop.f32.mrf.mxu2 }
 0x14b   :  { %306 = vst [vmem:[#allocation2] sm:$0xff] %v300_v9 }
 0x152   :  { %v303_v10 = vpop.f32.mrf.mxu2 }
 0x153   :  { %307 = vst [vmem:[#allocation2 + $0x8] sm:$0xff] %v303_v10 }
 0x154   :  { %320 = dma.vmem_to_hbm [thread:$0]  %s313_s2, 256, %s315_s29, [#allocation3], %s376_s30, %s376_s30, %s377_s5  }
 0x155   :  { %373 = dma.done.wait [#allocation3], 256  }
 0x156   :  { %374 = vsyncadd [#allocation3], 4294967040 }
 0x157   :  { %325 = vsyncpa [#allocation3], 1 }

</bundles_post_ra>
